<compile_context>
chip_gen: v7x
topology: tpu7x:2x2x1
jax: 0.10.0
libtpu: 0.0.40
codegen_flags: <defaults>
</compile_context>

<pallas_src>
from functools import partial

import jax
import jax.numpy as jnp
from jax import lax
from jax.experimental import pallas as pl
from jax.experimental.pallas import tpu as pltpu


def _linear_kernel(x_ref, w_ref, b_ref, y_ref):
    # x: (B, IN), w: (OUT, IN) PyTorch layout, b: (1, OUT)
    x = x_ref[...]
    w = w_ref[...]
    b = b_ref[...]
    # Contract x dim 1 with w dim 1  ->  (B, OUT) == x @ W^T, no transpose needed.
    y = lax.dot_general(
        x, w,
        dimension_numbers=(((1,), (1,)), ((), ())),
        preferred_element_type=jnp.float32,
    ) + b
    y_ref[...] = y.astype(y_ref.dtype)


@jax.jit
def net_forward(x, weight, bias):
    """Pallas equivalent of Net.forward.

    Args:
      x:      (B, 4)  float32
      weight: (8, 4)  float32  (PyTorch nn.Linear layout: (out, in))
      bias:   (8,)    float32
    Returns:
      (x_sim, x_real): two (B, 8) float32 results (identical values, matching
      the PyTorch module which shares weight/bias between fc1 and real_fc1;
      the same array is returned twice).
    """
    B, in_f = x.shape
    out_f = weight.shape[0]

    b2 = bias.reshape(1, out_f)  # free under jit (fuses into the call's operand)

    itemsize = jnp.dtype(x.dtype).itemsize
    cost = pl.CostEstimate(
        flops=2 * B * in_f * out_f,
        transcendentals=0,
        bytes_accessed=itemsize * (B * in_f + out_f * in_f + out_f + B * out_f),
    )

    y = pl.pallas_call(
        _linear_kernel,
        out_shape=jax.ShapeDtypeStruct((B, out_f), x.dtype),
        in_specs=[
            pl.BlockSpec((B, in_f), lambda: (0, 0)),
            pl.BlockSpec((out_f, in_f), lambda: (0, 0)),
            pl.BlockSpec((1, out_f), lambda: (0, 0)),
        ],
        out_specs=pl.BlockSpec((B, out_f), lambda: (0, 0)),
        cost_estimate=cost,
        compiler_params=pltpu.CompilerParams(),
    )(x, weight, b2)

    # SimulatedLinear and Linear share parameters -> identical outputs.
    return y, y


if __name__ == "__main__":
    key = jax.random.PRNGKey(0)
    kx, kw, kb = jax.random.split(key, 3)

    B, IN, OUT = 8, 4, 8

    # Deterministic parameter init (mimics nn.Linear's uniform(-1/sqrt(in), 1/sqrt(in)))
    bound = 1.0 / jnp.sqrt(jnp.float32(IN))
    weight = jax.random.uniform(kw, (OUT, IN), jnp.float32, -bound, bound)
    bias = jax.random.uniform(kb, (OUT,), jnp.float32, -bound, bound)

    x = jax.random.normal(kx, (B, IN), jnp.float32)

    x_sim, x_real = net_forward(x, weight, bias)
    jax.block_until_ready((x_sim, x_real))

    # Reference check against plain JAX linear.
    ref = x @ weight.T + bias
    assert jnp.allclose(x_sim, ref, atol=1e-5), "x_sim mismatch"
    assert jnp.allclose(x_real, ref, atol=1e-5), "x_real mismatch"
    assert x_sim.shape == (B, OUT) and x_real.shape == (B, OUT)

    # TODO(synk): the PyTorch SimulatedLinear's MAERI hardware-simulation side
    # effects (cfg/tile files, cycle counts) and the forward's print() have no
    # numerical effect and no Pallas equivalent; only the math (x @ W^T + b)
    # is reproduced.
    print("KERNEL_OK")
</pallas_src>

<mosaic_0001>
module attributes {stable_mosaic.version = 11 : i64} {
  func.func @_linear_kernel(%arg0: memref<8x4xf32, #tpu.memory_space<vmem>>, %arg1: memref<8x4xf32, #tpu.memory_space<vmem>>, %arg2: memref<1x8xf32, #tpu.memory_space<vmem>>, %arg3: memref<8x8xf32, #tpu.memory_space<vmem>>) attributes {dimension_semantics = [], scalar_prefetch = 0 : i64, scratch_operands = 0 : i64, tpu.core_type = #tpu.core_type<tc>} {
    %c0 = arith.constant 0 : index
    %c0_0 = arith.constant 0 : index
    %0 = vector.load %arg0[%c0, %c0_0] : memref<8x4xf32, #tpu.memory_space<vmem>>, vector<8x4xf32>
    %c0_1 = arith.constant 0 : index
    %c0_2 = arith.constant 0 : index
    %1 = vector.load %arg1[%c0_1, %c0_2] : memref<8x4xf32, #tpu.memory_space<vmem>>, vector<8x4xf32>
    %c0_3 = arith.constant 0 : index
    %c0_4 = arith.constant 0 : index
    %2 = vector.load %arg2[%c0_3, %c0_4] : memref<1x8xf32, #tpu.memory_space<vmem>>, vector<1x8xf32>
    %cst = arith.constant dense<0.000000e+00> : vector<8x8xf32>
    %3 = tpu.matmul %0, %1, %cst {dimension_numbers = #tpu.dot_dimension_numbers<[1], [1], [0], [0], [0, 0, 1, 0], [], []>} : vector<8x4xf32>, vector<8x4xf32>, vector<8x8xf32> -> vector<8x8xf32>
    %4 = vector.broadcast %2 : vector<1x8xf32> to vector<8x8xf32>
    %5 = arith.addf %3, %4 : vector<8x8xf32>
    %c0_5 = arith.constant 0 : index
    %c0_6 = arith.constant 0 : index
    %6 = vector.load %arg3[%c0_5, %c0_6] : memref<8x8xf32, #tpu.memory_space<vmem>>, vector<8x8xf32>
    tpu.vector_store %arg3[%c0_5, %c0_6], %5 {strides = array<i32>} : memref<8x8xf32, #tpu.memory_space<vmem>>, vector<8x8xf32>,
    return
  }
}

</mosaic_0001>

<bundles_post_ra>
// kernel: net_forward.1
= control target key start
LH: loop header
LB: loop body
LE: loop exit
PB: predicated region body
PF: predicated region fallthrough
CT: control target
= control target key end

     0   :  { %vm23_vm0 = vcmask 31744   ;;  %v118_v0 = vmov 0.0   ;;  %vm119_vm1 = vmmov 0   ;;  %vm100_vm2 = vcmask 64512   ;;  %s152_s1 = inlined_call_operand.vmem [shape: f32[8,4], index: 1, kind: input, shape index: {}]   ;;  %s153_s0 = inlined_call_operand.vmem [shape: f32[8,4], index: 0, kind: input, shape index: {}]   ;;  %s154_s2 = inlined_call_operand.vmem [shape: f32[1,8], index: 2, kind: input, shape index: {}]   ;;  %s155_s3 = inlined_call_operand.vmem [shape: f32[8,8], index: 3, kind: output, shape index: {}]  }
   0x1   :  { %111 = vmatprep.subr.mxu0 %v118_v0  ;;  %v15_v1 = vld [vmem:[%s152_s1] sm:$0xff]  ;;  %113 = vmatprep.mubr.msk.f32.mxu0 %vm119_vm1, %v118_v0 }
   0x2   :  { %112 = vmatpush3.xpose.msk.msra.mxu0 %vm23_vm0, %v15_v1  ;;  %v14_v2 = vld [vmem:[%s153_s0] sm:$0xff] }
   0x3   :  { %v106_v3 = vld [vmem:[%s154_s2] ss:$0 sm:$0xff] }
   0x5   :  { %114 = vmatmul.mubr.msk.f32.vlgmr.msra.gmra.mrb[0].mxu0 %vm23_vm0, %v14_v2 }
  0xd8   :  { %v96_v4 = vpop.f32.mrb[0].mxu0 }
  0xd9   :  { %v97_v5 = vadd.f32 %v106_v3, %v96_v4  ;;  %v115_v6 = vpop.f32.mrb[1].mxu0 }
  0xdb   :  { %101 = vst.msk [vmem:[%s155_s3] sm:$0xff] %vm100_vm2, %v97_v5 }

</bundles_post_ra>
